<compile_context>
chip_gen: v7x
topology: tpu7x:2x2x1
jax: 0.10.0
libtpu: 0.0.40
codegen_flags: <defaults>
</compile_context>

<pallas_src>
import jax
import jax.numpy as jnp
from jax import lax
from jax.experimental import pallas as pl


def _slab_layout(d_in: int, hidden: int, d_out: int):
    """Row offsets of the packed parameter slab (shared by pack_params and the kernel).

    Layout (float32, width = max(hidden, d_out) lanes):
      rows [0, d_in)        : W1^T  (d_in, hidden)    -- pre-transposed
      row  d_in             : b1    (1, hidden)
      rows [d_in+1, ...)    : W2 native row (1, hidden)        if d_out == 1
                              W2^T          (hidden, d_out)    otherwise
      last row              : b2    (1, d_out)
    """
    row_b1 = d_in
    row_w2 = d_in + 1
    w2_rows = 1 if d_out == 1 else hidden
    row_b2 = row_w2 + w2_rows
    rows = row_b2 + 1
    width = max(hidden, d_out)
    return row_b1, row_w2, row_b2, rows, width


def pack_params(w1, b1, w2, b2):
    """One-time packing of (w1, b1, w2, b2) into a single f32 slab.

    W1 is stored transposed so the kernel contracts a plain (B,K)x(K,N) layout with no
    in-kernel transpose.  Call this ONCE per parameter update, not per training step.
    """
    hidden, d_in = w1.shape
    d_out = w2.shape[0]
    row_b1, row_w2, row_b2, rows, width = _slab_layout(d_in, hidden, d_out)

    slab = jnp.zeros((rows, width), jnp.float32)
    slab = slab.at[:d_in, :hidden].set(jnp.asarray(w1, jnp.float32).T)
    slab = slab.at[row_b1, :hidden].set(jnp.asarray(b1, jnp.float32))
    if d_out == 1:
        slab = slab.at[row_w2, :hidden].set(jnp.asarray(w2, jnp.float32)[0])
    else:
        slab = slab.at[row_w2:row_b2, :d_out].set(jnp.asarray(w2, jnp.float32).T)
    slab = slab.at[row_b2, :d_out].set(jnp.asarray(b2, jnp.float32))
    return slab


def _make_mlp_mse_kernel(batch: int, d_in: int, hidden: int, d_out: int):
    """Fused MLP + MSE kernel, specialized on static (batch, d_in, hidden, d_out)."""
    row_b1, row_w2, row_b2, _, _ = _slab_layout(d_in, hidden, d_out)

    def kernel(x_ref, p_ref, labels_ref, out_ref):
        x = x_ref[...]                                    # (B, d_in) f32
        b1 = p_ref[row_b1:row_b1 + 1, :hidden]            # (1, hidden)
        b2 = p_ref[row_b2:row_b2 + 1, :d_out]             # (1, d_out)

        # ---- Layer 1: x @ W1^T + b1 --------------------------------------------
        if d_in <= 32:
            # Tiny K: unrolled VPU FMA chain (skip MXU fill/drain latency entirely).
            # W1 is pre-transposed, so p_ref[k, :hidden] is feature k's weight row.
            h = x[:, 0:1] * p_ref[0:1, :hidden] + b1
            for k in range(1, d_in):
                h = h + x[:, k:k + 1] * p_ref[k:k + 1, :hidden]
        else:
            # Larger shapes: plain (B,K)x(K,N) MXU matmul on the pre-transposed rows
            # (no in-kernel XLU transpose).
            h = lax.dot_general(x, p_ref[:d_in, :hidden],
                                (((1,), (0,)), ((), ())),
                                preferred_element_type=jnp.float32) + b1
        h = jnp.maximum(h, 0.0)                           # ReLU

        # ---- Layer 2: h @ W2^T + b2 --------------------------------------------
        if d_out == 1:
            # (B,H) x (H,1) would waste an entire MXU pass; keep it on VPU/XLU.
            w2 = p_ref[row_w2:row_w2 + 1, :hidden]        # (1, hidden), native row
            logits = jnp.sum(h * w2, axis=-1, keepdims=True) + b2
        else:
            w2t = p_ref[row_w2:row_b2, :d_out]            # (hidden, d_out), pre-transposed
            logits = lax.dot_general(h, w2t, (((1,), (0,)), ((), ())),
                                     preferred_element_type=jnp.float32) + b2

        # ---- MSE loss + single merged writeback ---------------------------------
        diff = logits - labels_ref[...]                   # (B, d_out) - (B, 1) broadcast
        loss = jnp.sum(diff * diff, axis=(0, 1), keepdims=True) * (
            1.0 / (batch * d_out))                        # (1, 1)

        # One output buffer / one writeback DMA: rows [0,B) = logits, row B = loss.
        out_ref[:batch, :] = logits
        out_ref[batch:, :] = jnp.broadcast_to(loss, (1, d_out))

    return kernel


def mock_model_forward(input_ids, params, labels=None, *, hidden=5, d_out=1):
    """Fused forward of MockModel.

    input_ids: (B, d_in); params: slab from pack_params (built once, reused);
    labels: (B,) or None.  Returns (logits (B, d_out), scalar MSE loss) or just logits.
    """
    B, d_in = input_ids.shape
    _, _, _, rows, width = _slab_layout(d_in, hidden, d_out)
    assert params.shape == (rows, width), "params slab does not match (d_in, hidden, d_out)"

    x_f = jnp.asarray(input_ids, jnp.float32)
    has_labels = labels is not None
    labels_col = (jnp.asarray(labels, jnp.float32).reshape(B, 1)
                  if has_labels else jnp.zeros((B, 1), jnp.float32))

    # Advisory cost so XLA knows this custom call is tiny and schedules around it.
    flops = 2 * B * d_in * hidden + 2 * B * hidden * d_out + B * hidden + 4 * B * d_out
    bytes_accessed = 4 * (B * d_in + rows * width + B + (B + 1) * d_out)
    cost = pl.CostEstimate(flops=flops, transcendentals=0, bytes_accessed=bytes_accessed)

    full = lambda shape: pl.BlockSpec(shape, lambda: (0,) * len(shape))

    # No grid: the whole problem is a handful of vregs (see scaling notes at top of file).
    out = pl.pallas_call(
        _make_mlp_mse_kernel(B, d_in, hidden, d_out),
        out_shape=jax.ShapeDtypeStruct((B + 1, d_out), jnp.float32),
        in_specs=[full((B, d_in)), full((rows, width)), full((B, 1))],
        out_specs=full((B + 1, d_out)),
        cost_estimate=cost,
    )(x_f, params, labels_col)

    logits = out[:B, :]
    if not has_labels:
        return logits
    loss = out[B, 0]
    return logits, loss


if __name__ == "__main__":
    input_size, hidden_size, output_size = 10, 5, 1
    batch = 8

    key = jax.random.PRNGKey(0)
    kx, kl, kw1, kb1, kw2, kb2 = jax.random.split(key, 6)

    # Deterministic parameter init (uniform, like nn.Linear's default family).
    bound1 = 1.0 / (input_size ** 0.5)
    w1 = jax.random.uniform(kw1, (hidden_size, input_size), jnp.float32, -bound1, bound1)
    b1 = jax.random.uniform(kb1, (hidden_size,), jnp.float32, -bound1, bound1)
    bound2 = 1.0 / (hidden_size ** 0.5)
    w2 = jax.random.uniform(kw2, (output_size, hidden_size), jnp.float32, -bound2, bound2)
    b2 = jax.random.uniform(kb2, (output_size,), jnp.float32, -bound2, bound2)

    x = jax.random.normal(kx, (batch, input_size), jnp.float32)
    labels = jax.random.normal(kl, (batch,), jnp.float32)

    # One-time parameter packing (outside the training step).
    params = pack_params(w1, b1, w2, b2)

    fwd = jax.jit(lambda xi, p, y: mock_model_forward(
        xi, p, y, hidden=hidden_size, d_out=output_size))
    logits, loss = fwd(x, params, labels)
    jax.block_until_ready((logits, loss))

    # Pure-JAX reference check.
    h_ref = jnp.maximum(x @ w1.T + b1, 0.0)
    logits_ref = h_ref @ w2.T + b2
    loss_ref = jnp.mean((logits_ref - labels[:, None]) ** 2)
    assert logits.shape == (batch, output_size)
    assert jnp.allclose(logits, logits_ref, atol=1e-5), "logits mismatch"
    assert jnp.allclose(loss, loss_ref, atol=1e-5), "loss mismatch"

    print("KERNEL_OK")
</pallas_src>

<mosaic_0001>
module attributes {stable_mosaic.version = 11 : i64} {
  func.func @kernel(%arg0: memref<8x10xf32, #tpu.memory_space<vmem>>, %arg1: memref<13x5xf32, #tpu.memory_space<vmem>>, %arg2: memref<8x1xf32, #tpu.memory_space<vmem>>, %arg3: memref<9x1xf32, #tpu.memory_space<vmem>>) attributes {dimension_semantics = [], scalar_prefetch = 0 : i64, scratch_operands = 0 : i64, tpu.core_type = #tpu.core_type<tc>} {
    %c0 = arith.constant 0 : index
    %c0_0 = arith.constant 0 : index
    %0 = vector.load %arg0[%c0, %c0_0] : memref<8x10xf32, #tpu.memory_space<vmem>>, vector<8x10xf32>
    %c10 = arith.constant 10 : index
    %c0_1 = arith.constant 0 : index
    %1 = vector.load %arg1[%c10, %c0_1] : memref<13x5xf32, #tpu.memory_space<vmem>>, vector<1x5xf32>
    %c12 = arith.constant 12 : index
    %c0_2 = arith.constant 0 : index
    %2 = vector.load %arg1[%c12, %c0_2] : memref<13x5xf32, #tpu.memory_space<vmem>>, vector<1x1xf32>
    %3 = vector.extract_strided_slice %0 {offsets = [0, 0], sizes = [8, 1], strides = [1, 1]} : vector<8x10xf32> to vector<8x1xf32>
    %c0_3 = arith.constant 0 : index
    %c0_4 = arith.constant 0 : index
    %4 = vector.load %arg1[%c0_3, %c0_4] : memref<13x5xf32, #tpu.memory_space<vmem>>, vector<1x5xf32>
    %5 = vector.broadcast %3 : vector<8x1xf32> to vector<8x5xf32>
    %6 = vector.broadcast %4 : vector<1x5xf32> to vector<8x5xf32>
    %7 = arith.mulf %5, %6 : vector<8x5xf32>
    %8 = vector.broadcast %1 : vector<1x5xf32> to vector<8x5xf32>
    %9 = arith.addf %7, %8 : vector<8x5xf32>
    %10 = vector.extract_strided_slice %0 {offsets = [0, 1], sizes = [8, 1], strides = [1, 1]} : vector<8x10xf32> to vector<8x1xf32>
    %c1 = arith.constant 1 : index
    %c0_5 = arith.constant 0 : index
    %11 = vector.load %arg1[%c1, %c0_5] : memref<13x5xf32, #tpu.memory_space<vmem>>, vector<1x5xf32>
    %12 = vector.broadcast %10 : vector<8x1xf32> to vector<8x5xf32>
    %13 = vector.broadcast %11 : vector<1x5xf32> to vector<8x5xf32>
    %14 = arith.mulf %12, %13 : vector<8x5xf32>
    %15 = arith.addf %9, %14 : vector<8x5xf32>
    %16 = vector.extract_strided_slice %0 {offsets = [0, 2], sizes = [8, 1], strides = [1, 1]} : vector<8x10xf32> to vector<8x1xf32>
    %c2 = arith.constant 2 : index
    %c0_6 = arith.constant 0 : index
    %17 = vector.load %arg1[%c2, %c0_6] : memref<13x5xf32, #tpu.memory_space<vmem>>, vector<1x5xf32>
    %18 = vector.broadcast %16 : vector<8x1xf32> to vector<8x5xf32>
    %19 = vector.broadcast %17 : vector<1x5xf32> to vector<8x5xf32>
    %20 = arith.mulf %18, %19 : vector<8x5xf32>
    %21 = arith.addf %15, %20 : vector<8x5xf32>
    %22 = vector.extract_strided_slice %0 {offsets = [0, 3], sizes = [8, 1], strides = [1, 1]} : vector<8x10xf32> to vector<8x1xf32>
    %c3 = arith.constant 3 : index
    %c0_7 = arith.constant 0 : index
    %23 = vector.load %arg1[%c3, %c0_7] : memref<13x5xf32, #tpu.memory_space<vmem>>, vector<1x5xf32>
    %24 = vector.broadcast %22 : vector<8x1xf32> to vector<8x5xf32>
    %25 = vector.broadcast %23 : vector<1x5xf32> to vector<8x5xf32>
    %26 = arith.mulf %24, %25 : vector<8x5xf32>
    %27 = arith.addf %21, %26 : vector<8x5xf32>
    %28 = vector.extract_strided_slice %0 {offsets = [0, 4], sizes = [8, 1], strides = [1, 1]} : vector<8x10xf32> to vector<8x1xf32>
    %c4 = arith.constant 4 : index
    %c0_8 = arith.constant 0 : index
    %29 = vector.load %arg1[%c4, %c0_8] : memref<13x5xf32, #tpu.memory_space<vmem>>, vector<1x5xf32>
    %30 = vector.broadcast %28 : vector<8x1xf32> to vector<8x5xf32>
    %31 = vector.broadcast %29 : vector<1x5xf32> to vector<8x5xf32>
    %32 = arith.mulf %30, %31 : vector<8x5xf32>
    %33 = arith.addf %27, %32 : vector<8x5xf32>
    %34 = vector.extract_strided_slice %0 {offsets = [0, 5], sizes = [8, 1], strides = [1, 1]} : vector<8x10xf32> to vector<8x1xf32>
    %c5 = arith.constant 5 : index
    %c0_9 = arith.constant 0 : index
    %35 = vector.load %arg1[%c5, %c0_9] : memref<13x5xf32, #tpu.memory_space<vmem>>, vector<1x5xf32>
    %36 = vector.broadcast %34 : vector<8x1xf32> to vector<8x5xf32>
    %37 = vector.broadcast %35 : vector<1x5xf32> to vector<8x5xf32>
    %38 = arith.mulf %36, %37 : vector<8x5xf32>
    %39 = arith.addf %33, %38 : vector<8x5xf32>
    %40 = vector.extract_strided_slice %0 {offsets = [0, 6], sizes = [8, 1], strides = [1, 1]} : vector<8x10xf32> to vector<8x1xf32>
    %c6 = arith.constant 6 : index
    %c0_10 = arith.constant 0 : index
    %41 = vector.load %arg1[%c6, %c0_10] : memref<13x5xf32, #tpu.memory_space<vmem>>, vector<1x5xf32>
    %42 = vector.broadcast %40 : vector<8x1xf32> to vector<8x5xf32>
    %43 = vector.broadcast %41 : vector<1x5xf32> to vector<8x5xf32>
    %44 = arith.mulf %42, %43 : vector<8x5xf32>
    %45 = arith.addf %39, %44 : vector<8x5xf32>
    %46 = vector.extract_strided_slice %0 {offsets = [0, 7], sizes = [8, 1], strides = [1, 1]} : vector<8x10xf32> to vector<8x1xf32>
    %c7 = arith.constant 7 : index
    %c0_11 = arith.constant 0 : index
    %47 = vector.load %arg1[%c7, %c0_11] : memref<13x5xf32, #tpu.memory_space<vmem>>, vector<1x5xf32>
    %48 = vector.broadcast %46 : vector<8x1xf32> to vector<8x5xf32>
    %49 = vector.broadcast %47 : vector<1x5xf32> to vector<8x5xf32>
    %50 = arith.mulf %48, %49 : vector<8x5xf32>
    %51 = arith.addf %45, %50 : vector<8x5xf32>
    %52 = vector.extract_strided_slice %0 {offsets = [0, 8], sizes = [8, 1], strides = [1, 1]} : vector<8x10xf32> to vector<8x1xf32>
    %c8 = arith.constant 8 : index
    %c0_12 = arith.constant 0 : index
    %53 = vector.load %arg1[%c8, %c0_12] : memref<13x5xf32, #tpu.memory_space<vmem>>, vector<1x5xf32>
    %54 = vector.broadcast %52 : vector<8x1xf32> to vector<8x5xf32>
    %55 = vector.broadcast %53 : vector<1x5xf32> to vector<8x5xf32>
    %56 = arith.mulf %54, %55 : vector<8x5xf32>
    %57 = arith.addf %51, %56 : vector<8x5xf32>
    %58 = vector.extract_strided_slice %0 {offsets = [0, 9], sizes = [8, 1], strides = [1, 1]} : vector<8x10xf32> to vector<8x1xf32>
    %c9 = arith.constant 9 : index
    %c0_13 = arith.constant 0 : index
    %59 = vector.load %arg1[%c9, %c0_13] : memref<13x5xf32, #tpu.memory_space<vmem>>, vector<1x5xf32>
    %60 = vector.broadcast %58 : vector<8x1xf32> to vector<8x5xf32>
    %61 = vector.broadcast %59 : vector<1x5xf32> to vector<8x5xf32>
    %62 = arith.mulf %60, %61 : vector<8x5xf32>
    %63 = arith.addf %57, %62 : vector<8x5xf32>
    %cst = arith.constant 0.000000e+00 : f32
    %64 = vector.broadcast %cst : f32 to vector<8x5xf32>
    %65 = arith.maximumf %63, %64 : vector<8x5xf32>
    %c11 = arith.constant 11 : index
    %c0_14 = arith.constant 0 : index
    %66 = vector.load %arg1[%c11, %c0_14] : memref<13x5xf32, #tpu.memory_space<vmem>>, vector<1x5xf32>
    %67 = vector.broadcast %66 : vector<1x5xf32> to vector<8x5xf32>
    %68 = arith.mulf %65, %67 : vector<8x5xf32>
    %cst_15 = arith.constant dense<0.000000e+00> : vector<8xf32>
    %69 = vector.multi_reduction <add>, %68, %cst_15 [1] : vector<8x5xf32> to vector<8xf32>
    %70 = vector.shape_cast %69 : vector<8xf32> to vector<8x1xf32>
    %71 = vector.broadcast %2 : vector<1x1xf32> to vector<8x1xf32>
    %72 = arith.addf %70, %71 : vector<8x1xf32>
    %c0_16 = arith.constant 0 : index
    %c0_17 = arith.constant 0 : index
    %73 = vector.load %arg2[%c0_16, %c0_17] : memref<8x1xf32, #tpu.memory_space<vmem>>, vector<8x1xf32>
    %74 = arith.subf %72, %73 : vector<8x1xf32>
    %75 = arith.mulf %74, %74 : vector<8x1xf32>
    %76 = vector.shape_cast %75 : vector<8x1xf32> to vector<1x8x1xf32>
    %cst_18 = arith.constant dense<0.000000e+00> : vector<1xf32>
    %77 = vector.multi_reduction <add>, %76, %cst_18 [1, 2] : vector<1x8x1xf32> to vector<1xf32>
    %78 = vector.shape_cast %77 : vector<1xf32> to vector<1x1x1xf32>
    %79 = vector.extract %78[0, 0, 0] : f32 from vector<1x1x1xf32>
    %80 = vector.broadcast %79 : f32 to vector<1x1xf32>
    %cst_19 = arith.constant 1.250000e-01 : f32
    %81 = vector.broadcast %cst_19 : f32 to vector<1x1xf32>
    %82 = arith.mulf %80, %81 : vector<1x1xf32>
    %c0_20 = arith.constant 0 : index
    %c0_21 = arith.constant 0 : index
    %83 = vector.load %arg3[%c0_20, %c0_21] : memref<9x1xf32, #tpu.memory_space<vmem>>, vector<8x1xf32>
    tpu.vector_store %arg3[%c0_20, %c0_21], %72 {strides = array<i32>} : memref<9x1xf32, #tpu.memory_space<vmem>>, vector<8x1xf32>,
    %c8_22 = arith.constant 8 : index
    %c0_23 = arith.constant 0 : index
    %84 = vector.load %arg3[%c8_22, %c0_23] : memref<9x1xf32, #tpu.memory_space<vmem>>, vector<1x1xf32>
    tpu.vector_store %arg3[%c8_22, %c0_23], %82 {strides = array<i32>} : memref<9x1xf32, #tpu.memory_space<vmem>>, vector<1x1xf32>,
    return
  }
}

</mosaic_0001>

<bundles_post_ra>
// kernel: _lambda_.1
= control target key start
LH: loop header
LB: loop body
LE: loop exit
PB: predicated region body
PF: predicated region fallthrough
CT: control target
= control target key end

     0   :  { %v207_v0 = vmov 2   ;;  %v208_v1 = vmov 0   ;;  %v209_v3 = vmov 3   ;;  %v210_v4 = vmov 1   ;;  %s288_s0 = inlined_call_operand.vmem [shape: f32[8,10], index: 0, kind: input, shape index: {}]   ;;  %s289_s1 = inlined_call_operand.vmem [shape: f32[13,5], index: 1, kind: input, shape index: {}]   ;;  %s290_s2 = inlined_call_operand.vmem [shape: f32[8,1], index: 2, kind: input, shape index: {}]   ;;  %s291_s3 = inlined_call_operand.vmem [shape: f32[9,1], index: 3, kind: output, shape index: {}]  }
   0x1   :  { %198 = vset.pattern.permute.xlu1 %v207_v0  ;;  %196 = vset.pattern.permute.xlu0 %v208_v1  ;;  %v14_v2 = vld [vmem:[%s288_s0] sm:$0xff]  ;;  %v211_v5 = vmov 4   ;;  %v212_v6 = vmov 5   ;;  %v213_v7 = vmov 6   ;;  %v214_v8 = vmov 8  }
   0x2   :  { %46 = vperm.xlu1 %198, %v14_v2   ;;  %20 = vperm.xlu0 %196, %v14_v2   ;;  %v215_v9 = vmov 7   ;;  %v216_v10 = vmov 9   ;;  %v171_v11 = vld [vmem:[%s289_s1] ss:$0 sm:$0xff]  ;;  %v172_v14 = vld [vmem:[%s289_s1 + $0xa] ss:$0 sm:$0xff] }
   0x3   :  { %v173_v16 = vld [vmem:[%s289_s1 + $0x1] ss:$0 sm:$0xff]  ;;  %v174_v18 = vld [vmem:[%s289_s1 + $0x2] ss:$0 sm:$0xff]  ;;  %v175_v22 = vld [vmem:[%s289_s1 + $0x3] ss:$0 sm:$0xff] }
   0x4   :  { %v176_v25 = vld [vmem:[%s289_s1 + $0x4] ss:$0 sm:$0xff]  ;;  %v177_v29 = vld [vmem:[%s289_s1 + $0x5] ss:$0 sm:$0xff]  ;;  %v178_v35 = vld [vmem:[%s289_s1 + $0x6] ss:$0 sm:$0xff] }
   0x5   :  { %v179_v39 = vld [vmem:[%s289_s1 + $0x7] ss:$0 sm:$0xff]  ;;  %v180_v40 = vld [vmem:[%s289_s1 + $0x8] ss:$0 sm:$0xff]  ;;  %v181_v47 = vld [vmem:[%s289_s1 + $0x9] ss:$0 sm:$0xff] }
   0x6   :  { %199 = vset.pattern.permute.xlu1 %v209_v3  ;;  %197 = vset.pattern.permute.xlu0 %v210_v4  ;;  %v182_v52 = vld [vmem:[%s289_s1 + $0xb] ss:$0 sm:$0xff]  ;;  %vm139_vm0 = vcmask 39936   ;;  %v183_v56 = vld [vmem:[%s289_s1 + $0xc] ss:$0 sm:$0xff]  ;;  %v148_v57 = vld [vmem:[%s290_s2] sm:$0xff] }
   0x7   :  { %57 = vperm.xlu1 %199, %v14_v2   ;;  %35 = vperm.xlu0 %197, %v14_v2   ;;  %vm151_vm1 = vcmask 7168   ;;  %vm165_vm2 = vcmask 0  }
   0xb   :  { %200 = vset.pattern.permute.xlu1 %v211_v5  ;;  %201 = vset.pattern.permute.xlu0 %v212_v6 }
   0xc   :  { %68 = vperm.xlu1 %200, %v14_v2   ;;  %79 = vperm.xlu0 %201, %v14_v2  }
  0x10   :  { %202 = vset.pattern.permute.xlu1 %v213_v7  ;;  %204 = vset.pattern.permute.xlu0 %v214_v8 }
  0x11   :  { %90 = vperm.xlu1 %202, %v14_v2   ;;  %112 = vperm.xlu0 %204, %v14_v2  }
  0x15   :  { %203 = vset.pattern.permute.xlu1 %v215_v9  ;;  %206 = vset.pattern.permute.xlu0 %v216_v10 }
  0x16   :  { %101 = vperm.xlu1 %203, %v14_v2  }
  0x1a   :  { %205 = vset.pattern.permute.xlu1 %v216_v10 }
  0x1b   :  { %123 = vperm.xlu1 %205, %v14_v2  }
  0x81   :  { %v47_v12 = vpop.permute.xlu1 %46  ;;  %v21_v13 = vpop.permute.xlu0 %20 }
  0x82   :  { %v27_v15 = vmul.f32 %v171_v11, %v21_v13  ;;  %v53_v23 = vmul.f32 %v174_v18, %v47_v12 }
  0x84   :  { %v32_v17 = vadd.f32 %v172_v14, %v27_v15 }
  0x86   :  { %v58_v19 = vpop.permute.xlu1 %57  ;;  %v36_v20 = vpop.permute.xlu0 %35 }
  0x87   :  { %v42_v21 = vmul.f32 %v173_v16, %v36_v20  ;;  %v64_v26 = vmul.f32 %v175_v22, %v58_v19 }
  0x89   :  { %v43_v24 = vadd.f32 %v42_v21, %v32_v17 }
  0x8b   :  { %v54_v27 = vadd.f32 %v53_v23, %v43_v24  ;;  %v69_v28 = vpop.permute.xlu1 %68  ;;  %v80_v30 = vpop.permute.xlu0 %79 }
  0x8c   :  { %v75_v31 = vmul.f32 %v176_v25, %v69_v28  ;;  %v86_v33 = vmul.f32 %v177_v29, %v80_v30 }
  0x8d   :  { %v65_v32 = vadd.f32 %v64_v26, %v54_v27 }
  0x8f   :  { %v76_v34 = vadd.f32 %v75_v31, %v65_v32 }
  0x90   :  { %v91_v36 = vpop.permute.xlu1 %90  ;;  %v113_v41 = vpop.permute.xlu0 %112 }
  0x91   :  { %v87_v37 = vadd.f32 %v86_v33, %v76_v34  ;;  %v97_v38 = vmul.f32 %v178_v35, %v91_v36  ;;  %v119_v45 = vmul.f32 %v180_v40, %v113_v41 }
  0x93   :  { %v98_v43 = vadd.f32 %v97_v38, %v87_v37 }
  0x95   :  { %v102_v42 = vpop.permute.xlu1 %101 }
  0x96   :  { %v108_v44 = vmul.f32 %v179_v39, %v102_v42 }
  0x98   :  { %v109_v46 = vadd.f32 %v108_v44, %v98_v43 }
  0x9a   :  { %v120_v48 = vadd.f32 %v119_v45, %v109_v46  ;;  %v124_v49 = vpop.permute.xlu1 %123 }
  0x9b   :  { %v130_v50 = vmul.f32 %v181_v47, %v124_v49 }
  0x9d   :  { %v131_v51 = vadd.f32 %v130_v50, %v120_v48 }
  0x9f   :  { %v132_v53 = vmax.f32 %v131_v51, 0.0 }
  0xa1   :  { %v138_v54 = vmul.f32 %v182_v52, %v132_v53 }
  0xa3   :  { %v140_v55 = vsel %vm139_vm0, %v138_v54, 0.0 }
  0xa4   :  { %141 = vadd.xlane.f32.xlu1 %v140_v55 }
 0x131   :  { %v142_v58 = vpop.xlane.xlu1 %141 }
 0x132   :  { %v147_v59 = vadd.f32 %v183_v56, %v142_v58 }
 0x134   :  { %v149_v60 = vsub.f32 %v147_v59, %v148_v57  ;;  %164 = vst.msk [vmem:[%s291_s3] sm:$0xff] %vm151_vm1, %v147_v59 }
 0x136   :  { %v150_v61 = vmul.f32 %v149_v60, %v149_v60 }
 0x138   :  { %v152_v62 = vsel %vm151_vm1, %v150_v61, 0.0 }
 0x139   :  { %153 = vadd.xlane.f32.xlu0 %v152_v62 }
 0x1c6   :  { %v154_v63 = vpop.xlane.xlu0 %153 }
 0x1c7   :  { %v155_v0 = vrot.slane %v154_v63, 4 }
 0x1c9   :  { %v156_v1 = vadd.f32 %v155_v0, %v154_v63 }
 0x1cb   :  { %v157_v2 = vrot.slane %v156_v1, 2 }
 0x1cd   :  { %v158_v3 = vadd.f32 %v157_v2, %v156_v1 }
 0x1cf   :  { %v159_v4 = vrot.slane %v158_v3, 1 }
 0x1d1   :  { %v160_v5 = vadd.f32 %v159_v4, %v158_v3 }
 0x1d3   :  { %184 = vpush %v160_v5 }
 0x204   :  { %s185_s1 = spop %184 }
 0x205   :  { %v162_v6 = vstv %s185_s1 }
 0x206   :  { %v163_v7 = vmul.f32 0.125, %v162_v6 }
 0x208   :  { %166 = vst.msk [vmem:[%s291_s3 + $0x8] sm:$0x1] %vm165_vm2, %v163_v7 }

</bundles_post_ra>
